<compile_context>
chip_gen: v5e
topology: v5e:2x2
jax: 0.10.0
libtpu: 0.0.40
codegen_flags: <defaults>
</compile_context>

<pallas_src>
import math

import jax
import jax.numpy as jnp
from jax import lax
from jax.experimental import pallas as pl
from jax.experimental.pallas import tpu as pltpu

MAX_VAL = 1000000000000.0


def _make_kernel(global_num, local_num, inv_sqrt_dk):
    G, L = global_num, local_num

    def kernel(*refs):
        if L > 0:
            q_ref, k_ref, v_ref, mask_ref, gate_ref, out_ref, p_ref = refs
        else:
            q_ref, k_ref, v_ref, mask_ref, out_ref, p_ref = refs
            gate_ref = None

        # In-kernel bf16 casts for the MXU; all softmax math stays f32.
        qh = q_ref[...].astype(jnp.bfloat16)        # (H, tq, d_k)
        kh = k_ref[...].astype(jnp.bfloat16)        # (H, N,  d_k)
        vh = v_ref[...].astype(jnp.bfloat16)        # (H, N,  d_k)
        masked = mask_ref[...].astype(jnp.float32) == 0.0   # (tq, N) bool

        # Single H-head batched QK^T (contract d_k, batch over heads) -> MXU,
        # no explicit transpose of K.
        s = lax.dot_general(
            qh, kh,
            dimension_numbers=(((2,), (2,)), ((0,), (0,))),
            preferred_element_type=jnp.float32)      # (H, tq, N) f32

        # Per-head weighting: scalar 1/sqrt(d_k) for global heads, precomputed
        # sigmoid gate (scale folded in, streamed bf16) for local heads.
        if G > 0 and L > 0:
            s = jnp.concatenate(
                [s[:G] * inv_sqrt_dk,
                 s[G:] * gate_ref[...].astype(jnp.float32)],
                axis=0)
        elif L > 0:
            s = s * gate_ref[...].astype(jnp.float32)
        else:
            s = s * inv_sqrt_dk

        # masked_fill (replace) to match torch, incl. fully-masked rows; then
        # one shared numerically-stable softmax over all H heads.
        s = jnp.where(masked[None], -MAX_VAL, s)
        m = jnp.max(s, axis=-1, keepdims=True)
        e = jnp.exp(s - m)
        denom = jnp.sum(e, axis=-1, keepdims=True)
        # approx reciprocal goes to the EUP slot instead of a full VPU divide;
        # returned p rows sum to 1 only to ~1e-3 relative.
        p = e * pl.reciprocal(denom, approx=True)    # (H, tq, N) f32

        o = lax.dot_general(
            p.astype(jnp.bfloat16), vh,
            dimension_numbers=(((2,), (1,)), ((0,), (0,))),
            preferred_element_type=jnp.float32)      # (H, tq, d_k) f32

        out_ref[...] = o.astype(out_ref.dtype)
        p_ref[...] = p.astype(p_ref.dtype)

    return kernel


def initial_attention_pallas(query, key, value, mask, gate_local, *,
                             global_num, local_num, q_tile=256):
    """query/key/value: [B,H,N,d_k]; mask: [B,1,N,N] (0 = masked, any dtype);
    gate_local: [local_num,N,N] bf16 (scale folded in) or None."""
    B, H, N, d_k = query.shape
    assert H == global_num + local_num

    # Query-axis tiling bounds the (H, tq, N) intermediates / p writeback.
    tq = N if N <= q_tile else q_tile
    if tq < N:
        assert N % tq == 0 and tq % 8 == 0, "q tile must divide N, multiple of 8"
    n_q = N // tq

    kernel = _make_kernel(global_num, local_num, 1.0 / math.sqrt(d_k))

    in_specs = [
        pl.BlockSpec((None, H, tq, d_k), lambda b, qi: (b, 0, qi, 0)),   # q
        pl.BlockSpec((None, H, N, d_k), lambda b, qi: (b, 0, 0, 0)),     # k (const over qi)
        pl.BlockSpec((None, H, N, d_k), lambda b, qi: (b, 0, 0, 0)),     # v (const over qi)
        pl.BlockSpec((None, None, tq, N), lambda b, qi: (b, 0, qi, 0)),  # mask
    ]
    args = [query, key, value, mask]
    if local_num > 0:
        # batch-invariant: only changes with the q tile index
        in_specs.append(pl.BlockSpec((local_num, tq, N), lambda b, qi: (0, qi, 0)))
        args.append(gate_local)

    out_specs = [
        pl.BlockSpec((None, H, tq, d_k), lambda b, qi: (b, 0, qi, 0)),   # out (f32)
        pl.BlockSpec((None, H, tq, N), lambda b, qi: (b, 0, qi, 0)),     # p_attn (bf16)
    ]

    # Derive the VMEM limit from the actual (double-buffered) block sizes plus
    # intermediates; clamp to 64 MiB so the same number is safe on v7x
    # (v5e/v6e have 128 MiB physical and could go up to ~96-100 MiB).
    isz = lambda a: jnp.dtype(a.dtype).itemsize
    blk_bytes = (H * tq * d_k * isz(query)                 # q
                 + 2 * H * N * d_k * isz(key)              # k, v
                 + tq * N * isz(mask)                      # mask
                 + (local_num * tq * N * 2 if local_num > 0 else 0)  # gate bf16
                 + H * tq * d_k * 4                        # out f32
                 + H * tq * N * 2)                         # p bf16
    interm_bytes = 3 * H * tq * N * 4                      # s / e / p live values
    vmem_bytes = int(min(64 * 1024 * 1024,
                         max(32 * 1024 * 1024,
                             2 * blk_bytes + interm_bytes + 8 * 1024 * 1024)))

    out, p_attn = pl.pallas_call(
        kernel,
        out_shape=(
            jax.ShapeDtypeStruct((B, H, N, d_k), jnp.float32),
            jax.ShapeDtypeStruct((B, H, N, N), jnp.bfloat16),
        ),
        grid_spec=pltpu.PrefetchScalarGridSpec(
            num_scalar_prefetch=0,
            grid=(B, n_q),
            in_specs=in_specs,
            out_specs=out_specs,
        ),
        compiler_params=pltpu.CompilerParams(
            dimension_semantics=("parallel", "parallel"),
            vmem_limit_bytes=vmem_bytes,
        ),
    )(*args)
    return out, p_attn


def build_local_gate(n, local_num, sigma, alpha, d_k):
    """sigmoid(rel_pos_score(distance)/0.1) with 1/sqrt(d_k) folded in, bf16."""
    x = jnp.arange(2 * n - 1, dtype=jnp.float32) - n
    init_val = alpha * jnp.exp(-((x / sigma) ** 2) / 2.0)            # (2n-1,)
    weight = jnp.tile(init_val[:, None], (1, local_num))             # (2n-1, L)
    pos_l = jnp.arange(n)[:, None]
    pos_r = jnp.arange(n)[None, :]
    distance = pos_r - pos_l + n - 1                                 # (n, n)
    reweight = weight[distance]                                      # (n, n, L)
    reweight = jnp.transpose(reweight, (2, 0, 1))                    # (L, n, n)
    gate = jax.nn.sigmoid(reweight / 0.1) * (1.0 / math.sqrt(d_k))
    return gate.astype(jnp.bfloat16)


def initial_attention_forward(query, key, value, mask, *, global_num, local_num,
                              sigma, alpha):
    B, H, N, d_k = query.shape
    assert H == global_num + local_num
    gate_local = (build_local_gate(N, local_num, sigma, alpha, d_k)
                  if local_num > 0 else None)
    out, p_attn = initial_attention_pallas(
        query, key, value, mask, gate_local,
        global_num=global_num, local_num=local_num)
    if global_num > 0:
        return out, (p_attn[:, :global_num], p_attn[:, global_num:])
    return out, p_attn


def _reference(query, key, value, mask, gate_local, global_num):
    """Pure-JAX reference using the same bf16 matmul inputs / folded gate."""
    qb = query.astype(jnp.bfloat16)
    kb = key.astype(jnp.bfloat16)
    vb = value.astype(jnp.bfloat16)
    s = jnp.einsum("bhqd,bhkd->bhqk", qb, kb, preferred_element_type=jnp.float32)
    scale = 1.0 / math.sqrt(query.shape[-1])
    gate = gate_local.astype(jnp.float32)
    s_l = s[:, global_num:] * gate[None]            # gate already folds the scale
    if global_num > 0:
        s = jnp.concatenate([s[:, :global_num] * scale, s_l], axis=1)
    else:
        s = s_l
    s = jnp.where(mask == 0, -MAX_VAL, s)
    p = jax.nn.softmax(s, axis=-1)
    o = jnp.einsum("bhqk,bhkd->bhqd", p.astype(jnp.bfloat16), vb,
                   preferred_element_type=jnp.float32)
    return o, p


if __name__ == "__main__":
    # Small config consistent with the module: n=16, d=64, d_k=16 -> h=4 heads,
    # locker_config num_attention_heads=2 (local), so global_num=2.
    B, N, d_k = 2, 16, 16
    global_num, local_num = 2, 2
    H = global_num + local_num
    sigma, alpha = 2.0, 1.0

    key0 = jax.random.PRNGKey(0)
    kq, kk, kv = jax.random.split(key0, 3)
    query = jax.random.normal(kq, (B, H, N, d_k), dtype=jnp.float32)
    key_t = jax.random.normal(kk, (B, H, N, d_k), dtype=jnp.float32)
    value = jax.random.normal(kv, (B, H, N, d_k), dtype=jnp.float32)
    # causal mask (1 = keep, 0 = masked), broadcast over heads as in torch;
    # streamed as int8 (4x cheaper than f32).
    mask = jnp.tril(jnp.ones((N, N), jnp.int8))[None, None].repeat(B, axis=0)

    out, (p_g, p_l) = initial_attention_forward(
        query, key_t, value, mask,
        global_num=global_num, local_num=local_num, sigma=sigma, alpha=alpha,
    )
    jax.block_until_ready(out)

    # sanity check vs. pure-JAX reference (same bf16 matmul inputs; tolerance
    # covers the EUP approx reciprocal, bf16 p_attn output, and MXU-vs-XLA
    # accumulation ordering)
    gate_local = build_local_gate(N, local_num, sigma, alpha, d_k)
    ref_out, ref_p = _reference(query, key_t, value, mask, gate_local, global_num)
    p_full = jnp.concatenate([p_g, p_l], axis=1).astype(jnp.float32)
    assert jnp.allclose(out, ref_out, atol=2e-2, rtol=2e-2)
    assert jnp.allclose(p_full, ref_p, atol=2e-2, rtol=2e-2)

    print("KERNEL_OK")
</pallas_src>

<mosaic_0001>
module attributes {stable_mosaic.version = 11 : i64} {
  func.func @kernel(%arg0: i32, %arg1: i32, %arg2: memref<1x4x16x16xf32, #tpu.memory_space<vmem>>, %arg3: memref<1x4x16x16xf32, #tpu.memory_space<vmem>>, %arg4: memref<1x4x16x16xf32, #tpu.memory_space<vmem>>, %arg5: memref<1x1x16x16xi8, #tpu.memory_space<vmem>>, %arg6: memref<2x16x16xbf16, #tpu.memory_space<vmem>>, %arg7: memref<1x4x16x16xf32, #tpu.memory_space<vmem>>, %arg8: memref<1x4x16x16xbf16, #tpu.memory_space<vmem>>) attributes {dimension_semantics = [#tpu.dimension_semantics<parallel>, #tpu.dimension_semantics<parallel>], iteration_bounds = array<i64: 2, 1>, scalar_prefetch = 0 : i64, scratch_operands = 0 : i64, tpu.core_type = #tpu.core_type<tc>, window_params = [{transform_indices = @transform_0, window_bounds = array<i64: 1, 4, 16, 16>}, {transform_indices = @transform_1, window_bounds = array<i64: 1, 4, 16, 16>}, {transform_indices = @transform_2, window_bounds = array<i64: 1, 4, 16, 16>}, {transform_indices = @transform_3, window_bounds = array<i64: 1, 1, 16, 16>}, {transform_indices = @transform_4, window_bounds = array<i64: 2, 16, 16>}, {transform_indices = @transform_5, window_bounds = array<i64: 1, 4, 16, 16>}, {transform_indices = @transform_6, window_bounds = array<i64: 1, 4, 16, 16>}]} {
    %c0 = arith.constant 0 : index
    %c0_0 = arith.constant 0 : index
    %c0_1 = arith.constant 0 : index
    %c0_2 = arith.constant 0 : index
    %0 = vector.load %arg2[%c0, %c0_0, %c0_1, %c0_2] : memref<1x4x16x16xf32, #tpu.memory_space<vmem>>, vector<1x4x16x16xf32>
    %1 = vector.shape_cast %0 : vector<1x4x16x16xf32> to vector<4x16x16xf32>
    %2 = arith.truncf %1 : vector<4x16x16xf32> to vector<4x16x16xbf16>
    %c0_3 = arith.constant 0 : index
    %c0_4 = arith.constant 0 : index
    %c0_5 = arith.constant 0 : index
    %c0_6 = arith.constant 0 : index
    %3 = vector.load %arg3[%c0_3, %c0_4, %c0_5, %c0_6] : memref<1x4x16x16xf32, #tpu.memory_space<vmem>>, vector<1x4x16x16xf32>
    %4 = vector.shape_cast %3 : vector<1x4x16x16xf32> to vector<4x16x16xf32>
    %5 = arith.truncf %4 : vector<4x16x16xf32> to vector<4x16x16xbf16>
    %c0_7 = arith.constant 0 : index
    %c0_8 = arith.constant 0 : index
    %c0_9 = arith.constant 0 : index
    %c0_10 = arith.constant 0 : index
    %6 = vector.load %arg4[%c0_7, %c0_8, %c0_9, %c0_10] : memref<1x4x16x16xf32, #tpu.memory_space<vmem>>, vector<1x4x16x16xf32>
    %7 = vector.shape_cast %6 : vector<1x4x16x16xf32> to vector<4x16x16xf32>
    %8 = arith.truncf %7 : vector<4x16x16xf32> to vector<4x16x16xbf16>
    %c0_11 = arith.constant 0 : index
    %c0_12 = arith.constant 0 : index
    %c0_13 = arith.constant 0 : index
    %c0_14 = arith.constant 0 : index
    %9 = vector.load %arg5[%c0_11, %c0_12, %c0_13, %c0_14] : memref<1x1x16x16xi8, #tpu.memory_space<vmem>>, vector<1x1x16x16xi8>
    %10 = vector.shape_cast %9 : vector<1x1x16x16xi8> to vector<16x16xi8>
    %11 = arith.sitofp %10 : vector<16x16xi8> to vector<16x16xf32>
    %cst = arith.constant 0.000000e+00 : f32
    %12 = vector.broadcast %cst : f32 to vector<16x16xf32>
    %13 = arith.cmpf oeq, %11, %12 : vector<16x16xf32>
    %cst_15 = arith.constant dense<0.000000e+00> : vector<4x16x16xf32>
    %14 = tpu.matmul %2, %5, %cst_15 {dimension_numbers = #tpu.dot_dimension_numbers<[2], [2], [1], [1], [0, 0, 0, 1, 1, 1], [0], [0]>} : vector<4x16x16xbf16>, vector<4x16x16xbf16>, vector<4x16x16xf32> -> vector<4x16x16xf32>
    %15 = vector.extract_strided_slice %14 {offsets = [0, 0, 0], sizes = [2, 16, 16], strides = [1, 1, 1]} : vector<4x16x16xf32> to vector<2x16x16xf32>
    %cst_16 = arith.constant 2.500000e-01 : f32
    %16 = vector.broadcast %cst_16 : f32 to vector<2x16x16xf32>
    %17 = arith.mulf %15, %16 : vector<2x16x16xf32>
    %18 = vector.extract_strided_slice %14 {offsets = [2, 0, 0], sizes = [2, 16, 16], strides = [1, 1, 1]} : vector<4x16x16xf32> to vector<2x16x16xf32>
    %c0_17 = arith.constant 0 : index
    %c0_18 = arith.constant 0 : index
    %c0_19 = arith.constant 0 : index
    %19 = vector.load %arg6[%c0_17, %c0_18, %c0_19] : memref<2x16x16xbf16, #tpu.memory_space<vmem>>, vector<2x16x16xbf16>
    %20 = arith.extf %19 : vector<2x16x16xbf16> to vector<2x16x16xf32>
    %21 = arith.mulf %18, %20 : vector<2x16x16xf32>
    %22 = tpu.concatenate %17, %21 in 0 : vector<2x16x16xf32>, vector<2x16x16xf32> -> vector<4x16x16xf32>
    %23 = vector.shape_cast %13 : vector<16x16xi1> to vector<1x16x16xi1>
    %cst_20 = arith.constant -9.99999995E+11 : f32
    %24 = vector.shape_cast %23 : vector<1x16x16xi1> to vector<1x16x16xi1>
    %25 = vector.broadcast %24 : vector<1x16x16xi1> to vector<4x16x16xi1>
    %26 = vector.broadcast %cst_20 : f32 to vector<4x16x16xf32>
    %27 = arith.select %25, %26, %22 : vector<4x16x16xi1>, vector<4x16x16xf32>
    %cst_21 = arith.constant dense<0xFF800000> : vector<4x16xf32>
    %28 = vector.multi_reduction <maximumf>, %27, %cst_21 [2] : vector<4x16x16xf32> to vector<4x16xf32>
    %29 = vector.shape_cast %28 : vector<4x16xf32> to vector<4x16x1xf32>
    %30 = vector.broadcast %29 : vector<4x16x1xf32> to vector<4x16x16xf32>
    %31 = arith.subf %27, %30 : vector<4x16x16xf32>
    %32 = math.exp %31 : vector<4x16x16xf32>
    %cst_22 = arith.constant dense<0.000000e+00> : vector<4x16xf32>
    %33 = vector.multi_reduction <add>, %32, %cst_22 [2] : vector<4x16x16xf32> to vector<4x16xf32>
    %34 = vector.shape_cast %33 : vector<4x16xf32> to vector<4x16x1xf32>
    %35 = tpu.reciprocal %34 {approx = true} : vector<4x16x1xf32> -> vector<4x16x1xf32>
    %36 = vector.broadcast %35 : vector<4x16x1xf32> to vector<4x16x16xf32>
    %37 = arith.mulf %32, %36 : vector<4x16x16xf32>
    %38 = arith.truncf %37 : vector<4x16x16xf32> to vector<4x16x16xbf16>
    %cst_23 = arith.constant dense<0.000000e+00> : vector<4x16x16xf32>
    %39 = tpu.matmul %38, %8, %cst_23 {dimension_numbers = #tpu.dot_dimension_numbers<[2], [1], [1], [2], [0, 0, 0, 1, 1, 2], [0], [0]>} : vector<4x16x16xbf16>, vector<4x16x16xbf16>, vector<4x16x16xf32> -> vector<4x16x16xf32>
    %c0_24 = arith.constant 0 : index
    %c0_25 = arith.constant 0 : index
    %c0_26 = arith.constant 0 : index
    %c0_27 = arith.constant 0 : index
    %40 = vector.load %arg7[%c0_24, %c0_25, %c0_26, %c0_27] : memref<1x4x16x16xf32, #tpu.memory_space<vmem>>, vector<1x4x16x16xf32>
    %41 = vector.shape_cast %40 : vector<1x4x16x16xf32> to vector<4x16x16xf32>
    %42 = vector.shape_cast %39 : vector<4x16x16xf32> to vector<1x4x16x16xf32>
    tpu.vector_store %arg7[%c0_24, %c0_25, %c0_26, %c0_27], %42 {strides = array<i32>} : memref<1x4x16x16xf32, #tpu.memory_space<vmem>>, vector<1x4x16x16xf32>,
    %43 = arith.truncf %37 : vector<4x16x16xf32> to vector<4x16x16xbf16>
    %c0_28 = arith.constant 0 : index
    %c0_29 = arith.constant 0 : index
    %c0_30 = arith.constant 0 : index
    %c0_31 = arith.constant 0 : index
    %44 = vector.load %arg8[%c0_28, %c0_29, %c0_30, %c0_31] : memref<1x4x16x16xbf16, #tpu.memory_space<vmem>>, vector<1x4x16x16xbf16>
    %45 = vector.shape_cast %44 : vector<1x4x16x16xbf16> to vector<4x16x16xbf16>
    %46 = vector.shape_cast %43 : vector<4x16x16xbf16> to vector<1x4x16x16xbf16>
    tpu.vector_store %arg8[%c0_28, %c0_29, %c0_30, %c0_31], %46 {strides = array<i32>} : memref<1x4x16x16xbf16, #tpu.memory_space<vmem>>, vector<1x4x16x16xbf16>,
    return
  }
  func.func @transform_0(%arg0: i32, %arg1: i32) -> (i32, i32, i32, i32) {
    %c0_i32 = arith.constant 0 : i32
    %c0_i32_0 = arith.constant 0 : i32
    %c0_i32_1 = arith.constant 0 : i32
    return %arg0, %c0_i32, %arg1, %c0_i32_0 : i32, i32, i32, i32
  }
  func.func @transform_1(%arg0: i32, %arg1: i32) -> (i32, i32, i32, i32) {
    %c0_i32 = arith.constant 0 : i32
    %c0_i32_0 = arith.constant 0 : i32
    %c0_i32_1 = arith.constant 0 : i32
    %c0_i32_2 = arith.constant 0 : i32
    return %arg0, %c0_i32, %c0_i32_0, %c0_i32_1 : i32, i32, i32, i32
  }
  func.func @transform_2(%arg0: i32, %arg1: i32) -> (i32, i32, i32, i32) {
    %c0_i32 = arith.constant 0 : i32
    %c0_i32_0 = arith.constant 0 : i32
    %c0_i32_1 = arith.constant 0 : i32
    %c0_i32_2 = arith.constant 0 : i32
    return %arg0, %c0_i32, %c0_i32_0, %c0_i32_1 : i32, i32, i32, i32
  }
  func.func @transform_3(%arg0: i32, %arg1: i32) -> (i32, i32, i32, i32) {
    %c0_i32 = arith.constant 0 : i32
    %c0_i32_0 = arith.constant 0 : i32
    %c0_i32_1 = arith.constant 0 : i32
    return %arg0, %c0_i32, %arg1, %c0_i32_0 : i32, i32, i32, i32
  }
  func.func @transform_4(%arg0: i32, %arg1: i32) -> (i32, i32, i32) {
    %c0_i32 = arith.constant 0 : i32
    %c0_i32_0 = arith.constant 0 : i32
    %c0_i32_1 = arith.constant 0 : i32
    return %c0_i32, %arg1, %c0_i32_0 : i32, i32, i32
  }
  func.func @transform_5(%arg0: i32, %arg1: i32) -> (i32, i32, i32, i32) {
    %c0_i32 = arith.constant 0 : i32
    %c0_i32_0 = arith.constant 0 : i32
    %c0_i32_1 = arith.constant 0 : i32
    return %arg0, %c0_i32, %arg1, %c0_i32_0 : i32, i32, i32, i32
  }
  func.func @transform_6(%arg0: i32, %arg1: i32) -> (i32, i32, i32, i32) {
    %c0_i32 = arith.constant 0 : i32
    %c0_i32_0 = arith.constant 0 : i32
    %c0_i32_1 = arith.constant 0 : i32
    return %arg0, %c0_i32, %arg1, %c0_i32_0 : i32, i32, i32, i32
  }
}

</mosaic_0001>

<bundles_post_ra>
// kernel: tpu_custom_call.1
= control target key start
LH: loop header
LB: loop body
LE: loop exit
PB: predicated region body
PF: predicated region fallthrough
CT: control target
= control target key end

     0   :  { %s1975_s0 = inlined_call_operand.hbm [shape: f32[2,4,16,16], index: 0, kind: input, shape index: {}]   ;;  %s1976_s1 = inlined_call_operand.hbm [shape: f32[2,4,16,16], index: 1, kind: input, shape index: {}]   ;;  %s1977_s2 = inlined_call_operand.hbm [shape: f32[2,4,16,16], index: 2, kind: input, shape index: {}]   ;;  %s1978_s3 = inlined_call_operand.hbm [shape: s8[2,1,16,16], index: 3, kind: input, shape index: {}]   ;;  %s1979_s4 = inlined_call_operand.hbm [shape: bf16[2,16,16], index: 4, kind: input, shape index: {}]   ;;  %s1980_s5 = inlined_call_operand.hbm [shape: f32[2,4,16,16], index: 5, kind: output, shape index: {0}]   ;;  %s1981_s6 = inlined_call_operand.hbm [shape: bf16[2,4,16,16], index: 6, kind: output, shape index: {1}]  }
   0x1   :  { %1989 = sst [smem:[#allocation25_spill]] %s1975_s0 }
   0x2   :  { %1990 = sst [smem:[#allocation26_spill]] %s1976_s1 }
   0x3   :  { %1991 = sst [smem:[#allocation27_spill]] %s1979_s4 }
   0x4   :  { %1992 = sst [smem:[#allocation28_spill]] %s1980_s5 }
   0x5   :  { %1993 = sst [smem:[#allocation29_spill]] %s1981_s6 }
   0x6   :  { %12 = vsyncpa [#allocation3], 0 }
   0x7   :  { %14 = vsyncpa [#allocation3 + $0x1], 0 }
   0x8   :  { %15 = vsyncpa [#allocation6], 0 }
   0x9   :  { %17 = vsyncpa [#allocation6 + $0x1], 0 }
   0xa   :  { %18 = vsyncpa [#allocation9], 0 }
   0xb   :  { %20 = vsyncpa [#allocation9 + $0x1], 0 }
   0xc   :  { %21 = vsyncpa [#allocation4], 0 }
   0xd   :  { %23 = vsyncpa [#allocation4 + $0x1], 0 }
   0xe   :  { %24 = vsyncpa [#allocation13], 0 }
   0xf   :  { %26 = vsyncpa [#allocation13 + $0x1], 0  ;;  %s1654_s21 = smov 0   ;;  %s1656_s22 = smov 0  }
  0x10   :  { %s1658_s23 = smov 0   ;;  %s1660_s24 = smov 0  }
  0x11   :  { %s1662_s25 = smov 0   ;;  %s1664_s26 = smov 0  }
  0x12 LB: > { %1994 = sst [smem:[#allocation20_spill]] %s1586_s21  ;;  %s1685_s27 = sadd.s32 4294967295, %s1606_s26   ;;  %s1606_s26 = sphi %s1664_s26, %s32_s26   ;;  %s1602_s25 = sphi %s1662_s25, %s2018_s25   ;;  %s1598_s24 = sphi %s1660_s24, %s2017_s24   ;;  %s1594_s23 = sphi %s1658_s23, %s2013_s23   ;;  %s1590_s22 = sphi %s1656_s22, %s2016_s22   ;;  %s1586_s21 = sphi %s1654_s21, %s2015_s21  }
  0x13   : > { %1995 = sst [smem:[#allocation21_spill]] %s1594_s23  ;;  %s1136_s28 = sadd.s32 4294967294, %s1606_s26  }
  0x14   : > { %p66_p0 = scmp.ne.s32.totalorder %s1590_s22, %s1586_s21  ;;  %p67_p1 = scmp.eq.s32.totalorder %s1685_s27, 0 }
  0x15   : > { %p198_p2 = scmp.eq.s32.totalorder %s1685_s27, 1  ;;  %p204_p3 = scmp.eq.s32.totalorder %s1136_s28, 1 }
  0x16   : > { %p1694_p4 = por %p67_p1, %p66_p0  ;;  %p1137_p5 = scmp.ge.s32.totalorder %s1606_s26, 1 }
  0x17   : > { %p1699_p6 = por %p204_p3, %p66_p0  ;;  %p239_p7 = scmp.lt.s32.totalorder %s1606_s26, 3 }
  0x18   : > { %s1999_s4 = sld [smem:[#allocation27_spill]]  ;;  %s1608_s11 = smov [#allocation10]  }
  0x19   : > { %s1997_s30 = scalar_select %p1699_p6, 1, 0 }
  0x1a   : > { %p1707_p8 = pnand %p1137_p5, %p239_p7  ;;  %s255_s12 = sshll.u32 %s1608_s11, 4  ;;  %s256_s12 = int_to_ptr.vmem [resolvable:$true] %s255_s12 }
  0x1b   : > { %1998 = sst [smem:[#allocation22_spill]] %s1997_s30  ;;  %p1139_p11 = scmp.ge.s32.totalorder %s1606_s26, 2 }
  0x1c   : > { %p1211_p9 = pneg %p1707_p8  ;;  %s1609_s13 = smov 64  }
  0x1d   : > { %s1610_s14 = smov 4   ;;  %s44_s15 = sadd.s32 1, %s1602_s25 }
  0x1e   : > { %s253_s9 = sshll.u32 %s1999_s4, 4  ;;  %p1212_p10 = pnand %p1211_p9, %p67_p1  ;;  %s254_s9 = int_to_ptr.hbm [resolvable:$true] %s253_s9 }
  0x1f   : > { %p46_p12 = scmp.ge.s32.totalorder %s44_s15, 2  ;;  %s53_s16 = sadd.s32 1, %s1594_s23 }
  0x20   : > { %1214 = dma.hbm_to_vmem [thread:$0]  (!%p1212_p10), %s254_s9, 256, %s256_s12, [#allocation9], %s1609_s13, %s1609_s13, %s1610_s14  }
  0x21   : > { %p60_p13 = scmp.ne.s32.totalorder %s1594_s23, %s1590_s22  ;;  %p61_p0 = scmp.eq.s32.totalorder %s1606_s26, 0 }
  0x22   : > { %s2020_s15 = smov (%p46_p12, %s44_s15), 0  ;;  %p1236_p7 = scmp.lt.s32.totalorder %s1606_s26, 2 }
  0x23   : > { %2001 = sst [smem:[#allocation23_spill]] %s2020_s15  ;;  %p62_p3 = por %p61_p0, %p60_p13 }
  0x24   : > { %p1725_p5 = por %p198_p2, %p60_p13  ;;  %s48_s18 = ssub.s32 %s1602_s25, %s2020_s15 }
  0x25   : > { %p51_p9 = scmp.eq.s32.totalorder %s48_s18, 0  ;;  %s1733_s19 = sand.u32 1, %s1594_s23  }
  0x26   : > { %s1140_s20 = sshll.u32 %s1733_s19, 6  ;;  %s1176_s28 = sshll.u32 %s1602_s25, 6 }
  0x27   : > { %s1738_s7 = scalar_select %p51_p9, %s1594_s23, %s53_s16  }
  0x28   : > { %p1740_p10 = pnand %p1236_p7, %p62_p3  ;;  %s1985_s9 = sand.u32 1, %s1606_s26  }
  0x29   : > { %2003 = sst [smem:[#allocation24_spill]] %s1738_s7  ;;  %s297_s18 = scalar_lea.vmem [#allocation5], %s1140_s20 }
  0x2a   : > { %s2005_s1 = sld [smem:[#allocation26_spill]]  ;;  %s305_s4 = sshll.u32 %s297_s18, 4  ;;  %s306_s4 = int_to_ptr.vmem [resolvable:$true] %s305_s4 }
  0x2b   : > { %s294_s16 = scalar_lea.sflag [#allocation6], %s1985_s9  ;;  %s1611_s15 = smov 128  }
  0x2c   : > { %s1612_s7 = smov 8   ;;  %s2006_s0 = sld [smem:[#allocation25_spill]] }
  0x2d   : > { %s270_s18 = scalar_lea.sflag [#allocation3], %s1733_s19  ;;  %s324_s5 = scalar_lea.hbm %s1977_s2, %s1176_s28 }
  0x2e   : > { %s1149_s30 = sshll.u32 %s1733_s19, 2  ;;  %s2007_s21 = sand.u32 1, %s1606_s26  }
  0x30   : > { %s302_s13 = scalar_lea.hbm %s2005_s1, %s1176_s28 }
  0x31   : > { %s303_s14 = sshll.u32 %s302_s13, 4  ;;  %s273_s13 = scalar_lea.vmem [#allocation2], %s1140_s20  ;;  %s304_s14 = int_to_ptr.hbm [resolvable:$true] %s303_s14 }
  0x32   : > { %1221 = dma.hbm_to_vmem [thread:$0]  (!%p1740_p10), %s304_s14, 1024, %s306_s4, %s294_s16, %s1611_s15, %s1611_s15, %s1612_s7  }
  0x33   : > { %s280_s11 = scalar_lea.hbm %s2006_s0, %s1176_s28  ;;  %s283_s1 = sshll.u32 %s273_s13, 4  ;;  %s284_s1 = int_to_ptr.vmem [resolvable:$true] %s283_s1 }
  0x34   : > { %s281_s12 = sshll.u32 %s280_s11, 4  ;;  %s325_s4 = sshll.u32 %s324_s5, 4  ;;  %s282_s12 = int_to_ptr.hbm [resolvable:$true] %s281_s12  ;;  %s326_s4 = int_to_ptr.hbm [resolvable:$true] %s325_s4 }
  0x35   : > { %1218 = dma.hbm_to_vmem [thread:$0]  (!%p1740_p10), %s282_s12, 1024, %s284_s1, %s270_s18, %s1611_s15, %s1611_s15, %s1612_s7  }
  0x36   : > { %s319_s14 = scalar_lea.vmem [#allocation7], %s1140_s20  ;;  %s1179_s11 = sshll.u32 %s1602_s25, 2 }
  0x37   : > { %s327_s23 = sshll.u32 %s319_s14, 4  ;;  %s348_s6 = scalar_lea.hbm %s1978_s3, %s1179_s11  ;;  %s328_s23 = int_to_ptr.vmem [resolvable:$true] %s327_s23 }
  0x38   : > { %1224 = dma.hbm_to_vmem [thread:$0]  (!%p1740_p10), %s326_s4, 1024, %s328_s23, %s294_s16, %s1611_s15, %s1611_s15, %s1612_s7  }
  0x39   : > { %s349_s1 = sshll.u32 %s348_s6, 4  ;;  %s341_s12 = scalar_lea.vmem [#allocation8], %s1149_s30  ;;  %s350_s1 = int_to_ptr.hbm [resolvable:$true] %s349_s1 }
  0x3a   : > { %s351_s18 = sshll.u32 %s341_s12, 4  ;;  %s338_s5 = scalar_lea.sflag [#allocation9], %s2007_s21  ;;  %s352_s18 = int_to_ptr.vmem [resolvable:$true] %s351_s18 }
  0x3b   : > { %s1613_s20 = smov 32   ;;  %s1614_s28 = smov 2  }
  0x3c   : > { %1227 = dma.hbm_to_vmem [thread:$0]  (!%p1740_p10), %s350_s1, 64, %s352_s18, %s338_s5, %s1613_s20, %s1613_s20, %s1614_s28  }
  0x3d   : > { %363 = sbr.rel (%p1707_p8) target bundleno = 643 (0x283), region = 40  ;;  %s1775_s15 = sand.u32 (!%p1707_p8), 1, %s1590_s22  }
  0x3e   : > { %s1778_s0 = sshll.u32 (!%p1707_p8), %s1775_s15, 6  ;;  %s366_s6 = scalar_lea.sflag (!%p1707_p8), [#allocation3], %s1775_s15 }
  0x3f   : > { %s1782_s19 = scalar_lea.vmem (!%p1707_p8), [#allocation2], %s1778_s0 }
  0x42   : > { %1561 = dma.done.wait (%p1694_p4), %s366_s6, 1024  }
  0x43   : > { %1563 = vsyncadd (%p1694_p4), %s366_s6, 4294966272  ;;  %s375_s10 = sand.u32 1, %s1685_s27   ;;  %s379_s8 = scalar_lea.vmem [#allocation5], %s1778_s0 }
  0x44   : > { %s376_s7 = scalar_lea.sflag [#allocation6], %s375_s10 }
  0x45   : > { %1565 = dma.done.wait (%p1694_p4), %s376_s7, 2048  }
  0x46   : > { %1567 = vsyncadd (%p1694_p4), %s376_s7, 4294965248  ;;  %s1156_s9 = sshll.u32 %s1775_s15, 2  ;;  %s1796_s16 = scalar_lea.vmem [#allocation7], %s1778_s0 }
  0x47   : > { %s396_s4 = scalar_lea.sflag [#allocation9], %s375_s10  ;;  %s1798_s14 = scalar_lea.vmem [#allocation8], %s1156_s9 }
  0x48   : > { %1569 = dma.done.wait (%p1694_p4), %s396_s4, 64  }
  0x49   : > { %1571 = vsyncadd (%p1694_p4), %s396_s4, 4294967232 }
  0x4a   : > { %1573 = dma.done.wait (%p67_p1), [#allocation9], 256  }
  0x4b   : > { %1575 = vsyncadd (%p67_p1), [#allocation9], 4294967040  ;;  %v476_v0 = vld [vmem:[%s379_s8] sm:$0xff]  ;;  %v477_v1 = vld [vmem:[%s379_s8 + $0x8] sm:$0xff]  ;;  %vm526_vm0 = vcmask 130048   ;;  %s1159_s27 = sshll.u32 %s1775_s15, 5 }
  0x4c   : > { %v480_v2 = vld [vmem:[%s379_s8 + $0x20] sm:$0xff]  ;;  %v484_v3 = vpack.c.bf16 %v476_v0, %v476_v0  ;;  %v485_v4 = vpack.c.bf16 %v477_v1, %v477_v1  ;;  %v481_v5 = vld [vmem:[%s379_s8 + $0x28] sm:$0xff]  ;;  %v482_v7 = vld [vmem:[%s379_s8 + $0x30] sm:$0xff]  ;;  %vm881_vm3 = vcmask 125952   ;;  %s1883_s29 = scalar_lea.vmem [#allocation12], %s1159_s27  ;;  %s1181_s23 = sshll.u32 %s1598_s24, 5 }
  0x4d   : > { %v488_v6 = vpack.c.bf16 %v480_v2, %v480_v2  ;;  %v483_v8 = vld [vmem:[%s379_s8 + $0x38] sm:$0xff]  ;;  %v489_v9 = vpack.c.bf16 %v481_v5, %v481_v5  ;;  %v490_v10 = vpack.c.bf16 %v482_v7, %v482_v7  ;;  %v478_v12 = vld [vmem:[%s379_s8 + $0x10] sm:$0xff]  ;;  %v460_v14 = vld [vmem:[%s1782_s19] sm:$0xff]  ;;  %s929_s30 = sshll.u32 %s1883_s29, 4  ;;  %s2008_s1 = sld [smem:[#allocation29_spill]]  ;;  %s930_s30 = int_to_ptr.vmem [resolvable:$true] %s929_s30 }
  0x4e   : > { %v491_v11 = vpack.c.bf16 %v483_v8, %v483_v8  ;;  %v479_v13 = vld [vmem:[%s379_s8 + $0x18] sm:$0xff]  ;;  %v523_v15 = vunpack.c.l.b16 %v484_v3  ;;  %v524_v16 = vunpack.c.l.b16 %v485_v4  ;;  %v486_v18 = vpack.c.bf16 %v478_v12, %v478_v12  ;;  %v461_v19 = vld [vmem:[%s1782_s19 + $0x8] sm:$0xff]  ;;  %v464_v20 = vld [vmem:[%s1782_s19 + $0x20] sm:$0xff]  ;;  %s896_s21 = scalar_lea.sflag [#allocation13], %s1775_s15 }
  0x4f   : > { %v584_v17 = vunpack.c.l.b16 %v488_v6  ;;  %v585_v21 = vunpack.c.l.b16 %v489_v9  ;;  %v614_v22 = vunpack.c.l.b16 %v490_v10  ;;  %v487_v24 = vpack.c.bf16 %v479_v13, %v479_v13  ;;  %v465_v25 = vld [vmem:[%s1782_s19 + $0x28] sm:$0xff]  ;;  %v466_v34 = vld [vmem:[%s1782_s19 + $0x30] sm:$0xff]  ;;  %v467_v35 = vld [vmem:[%s1782_s19 + $0x38] sm:$0xff] }
  0x50   : > { %v615_v23 = vunpack.c.l.b16 %v491_v11  ;;  %v525_v26 = vpack.c.b16 %v524_v16, %v523_v15  ;;  %v554_v27 = vunpack.c.l.b16 %v486_v18  ;;  %v468_v28 = vpack.c.bf16 %v460_v14, %v460_v14  ;;  %v462_v40 = vld [vmem:[%s1782_s19 + $0x10] sm:$0xff]  ;;  %v463_v41 = vld [vmem:[%s1782_s19 + $0x18] sm:$0xff]  ;;  %v1192_v60 = vld [vmem:[%s1798_s14] sm:$0xf]  }
  0x51   : > { %v469_v29 = vpack.c.bf16 %v461_v19, %v461_v19  ;;  %v586_v30 = vpack.c.b16 %v585_v21, %v584_v17  ;;  %v555_v32 = vunpack.c.l.b16 %v487_v24  ;;  %v472_v33 = vpack.c.bf16 %v464_v20, %v464_v20  ;;  %v1183_v2 = vld [vmem:[#allocation10] sm:$0xff]   ;;  %v1190_v3 = vld [vmem:[#allocation10 + $0x8] sm:$0xff]  }
  0x52   : > { %v616_v31 = vpack.c.b16 %v615_v23, %v614_v22  ;;  %v531_v36 = vsel %vm526_vm0, %v525_v26, 0  ;;  %v518_v37 = vunpack.c.l.b16 %v468_v28  ;;  %v473_v39 = vpack.c.bf16 %v465_v25, %v465_v25 }
  0x53   : > { %v519_v38 = vunpack.c.l.b16 %v469_v29  ;;  %540 = vmatpush.bf16.xpose.msra.mxu0 %v531_v36  ;;  %v591_v42 = vsel %vm526_vm0, %v586_v30, 0  ;;  %v556_v44 = vpack.c.b16 %v555_v32, %v554_v27  ;;  %v579_v45 = vunpack.c.l.b16 %v472_v33  ;;  %s928_s12 = scalar_lea.hbm %s2008_s1, %s1181_s23  ;;  %s1500_s19 = scalar_lea.hbm %s2008_s1, 64 }
  0x54   : > { %v621_v43 = vsel %vm526_vm0, %v616_v31, 0  ;;  %600 = vmatpush.bf16.xpose.msra.mxu2 %v591_v42  ;;  %v580_v46 = vunpack.c.l.b16 %v473_v39  ;;  %v474_v47 = vpack.c.bf16 %v466_v34, %v466_v34  ;;  %v475_v48 = vpack.c.bf16 %v467_v35, %v467_v35  ;;  %s931_s18 = sshll.u32 %s928_s12, 4  ;;  %s932_s18 = int_to_ptr.hbm [resolvable:$true] %s931_s18 }
  0x55   : > { %630 = vmatpush.bf16.xpose.msra.mxu3 %v621_v43  ;;  %v561_v49 = vsel %vm526_vm0, %v556_v44, 0  ;;  %v470_v50 = vpack.c.bf16 %v462_v40, %v462_v40  ;;  %v471_v51 = vpack.c.bf16 %v463_v41, %v463_v41  ;;  %v520_v52 = vpack.c.b16 %v519_v38, %v518_v37  ;;  %s1494_s5 = sshra.s32 %s932_s18, 4  ;;  %s1495_s5 = int_to_ptr.hbm [resolvable:$true] %s1494_s5 }
  0x56   : > { %570 = vmatpush.bf16.xpose.msra.mxu1 %v561_v49  ;;  %v609_v53 = vunpack.c.l.b16 %v474_v47  ;;  %v610_v54 = vunpack.c.l.b16 %v475_v48  ;;  %v581_v55 = vpack.c.b16 %v580_v46, %v579_v45  ;;  %v1193_v61 = vunpack.c.0.s8 %v1192_v60  ;;  %s1496_s20 = scalar_lea.hbm %s1495_s5, 32  ;;  %p1501_p8 = scmp.lt.s32.totalorder %s1495_s5, %s2008_s1 }
  0x57   : > { %v549_v56 = vunpack.c.l.b16 %v470_v50  ;;  %v550_v57 = vunpack.c.l.b16 %v471_v51  ;;  %v1194_v0 = vunpack.c.1.s8 %v1192_v60  ;;  %v1184_v6 = vunpack.c.l.bf16 %v1183_v2  ;;  %p1497_p1 = scmp.ne.s32.totalorder %s1495_s5, %s1496_s20  ;;  %p1502_p12 = scmp.lt.s32.totalorder %s1500_s19, %s1496_s20 }
  0x58   : > { %v611_v58 = vpack.c.b16 %v610_v54, %v609_v53  ;;  %v512_v62 = vcvt.s32.f32 %v1193_v61  ;;  %v1188_v7 = vunpack.c.l.bf16 %v1190_v3  ;;  %v1185_v22 = vunpack.c.h.bf16 %v1183_v2 }
  0x59   : > { %v551_v59 = vpack.c.b16 %v550_v57, %v549_v56  ;;  %v513_v8 = vcvt.s32.f32 %v1194_v0  ;;  %v1189_v23 = vunpack.c.h.bf16 %v1190_v3  ;;  %p1498_p2 = pnand %p1497_p1, %p1725_p5  ;;  %p1503_p13 = por %p1502_p12, %p1501_p8 }
  0x5a   : > { %1160 = vmatmul.msk.bf16.vlgmr.msra.gmra.mxu0 %vm526_vm0, %v520_v52  ;;  %vm514_vm1 = vcmp.eq.f32.partialorder %v512_v62, 0.0 }
  0x5b   : > { %1162 = vmatmul.msk.bf16.vlgmr.msra.gmra.mxu2 %vm526_vm0, %v581_v55  ;;  %vm515_vm2 = vcmp.eq.f32.partialorder %v513_v8, 0.0  ;;  %p1499_p4 = pneg %p1498_p2 }
  0x5c   : > { %1163 = vmatmul.msk.bf16.vlgmr.msra.gmra.mxu3 %vm526_vm0, %v611_v58 }
  0x5d   : > { %1161 = vmatmul.msk.bf16.vlgmr.msra.gmra.mxu1 %vm526_vm0, %v551_v59  ;;  %p1504_p0 = pnand %p1503_p13, %p1499_p4 }
  0xd7   : > { %v542_v63 = vpop.f32.mrf.mxu0 }
  0xd8   : > { %v637_v1 = vmul.f32 0.25, %v542_v63 }
  0xda   : > { %v657_v4 = vsel %vm514_vm1, -1e+12, %v637_v1  ;;  %v572_v9 = vpop.f32.mrf.mxu1 }
  0xdb   : > { %v665_v5 = vsel %vm526_vm0, %v657_v4, -inf  ;;  %v639_v33 = vmul.f32 0.25, %v572_v9 }
  0xdc   : > { %666 = vmax.xlane.f32.xlu2 %v665_v5 }
  0xdd   : > { %v659_v35 = vsel %vm514_vm1, -1e+12, %v639_v33 }
  0xde   : > { %v602_v10 = vpop.f32.mrf.mxu2  ;;  %v671_v37 = vsel %vm526_vm0, %v659_v35, -inf }
  0xdf   : > { %v632_v11 = vpop.f32.mrf.mxu3  ;;  %v649_v12 = vmul.f32 %v1184_v6, %v602_v10  ;;  %v544_v14 = vpop.f32.mrf.mxu0 }
  0xe0   : > { %v651_v13 = vmul.f32 %v1188_v7, %v632_v11  ;;  %v638_v15 = vmul.f32 0.25, %v544_v14 }
  0xe1   : > { %v661_v17 = vsel %vm514_vm1, -1e+12, %v649_v12 }
  0xe2   : > { %v663_v16 = vsel %vm514_vm1, -1e+12, %v651_v13  ;;  %v677_v19 = vsel %vm526_vm0, %v661_v17, -inf  ;;  %v658_v20 = vsel %vm515_vm2, -1e+12, %v638_v15  ;;  %v574_v28 = vpop.f32.mrf.mxu1  ;;  %v496_v15 = vld [vmem:[%s1796_s16 + $0x20] sm:$0xff] }
  0xe3   : > { %v683_v18 = vsel %vm526_vm0, %v663_v16, -inf  ;;  %678 = vmax.xlane.f32.xlu0 %v677_v19  ;;  %v668_v21 = vsel %vm526_vm0, %v658_v20, -inf  ;;  %v640_v34 = vmul.f32 0.25, %v574_v28 }
  0xe4   : > { %684 = vmax.xlane.f32.xlu1 %v683_v18  ;;  %669 = vmax.xlane.f32.xlu2 %v668_v21  ;;  %v504_v18 = vpack.c.bf16 %v496_v15, %v496_v15 }
  0xe5   : > { %v660_v36 = vsel %vm515_vm2, -1e+12, %v640_v34 }
  0xe6   : > { %v604_v24 = vpop.f32.mrf.mxu2  ;;  %v674_v38 = vsel %vm526_vm0, %v660_v36, -inf }
  0xe7   : > { %v634_v25 = vpop.f32.mrf.mxu3  ;;  %v650_v26 = vmul.f32 %v1185_v22, %v604_v24  ;;  %v492_v22 = vld [vmem:[%s1796_s16] sm:$0xff] }
  0xe8   : > { %v652_v27 = vmul.f32 %v1189_v23, %v634_v25  ;;  %v493_v23 = vld [vmem:[%s1796_s16 + $0x8] sm:$0xff]  ;;  %v500_v25 = vpack.c.bf16 %v492_v22, %v492_v22 }
  0xe9   : > { %v662_v30 = vsel %vm515_vm2, -1e+12, %v650_v26  ;;  %v501_v26 = vpack.c.bf16 %v493_v23, %v493_v23 }
  0xea   : > { %v664_v29 = vsel %vm515_vm2, -1e+12, %v652_v27  ;;  %v680_v32 = vsel %vm526_vm0, %v662_v30, -inf  ;;  %v824_v27 = vunpack.c.l.b16 %v504_v18 }
  0xeb   : > { %v686_v31 = vsel %vm526_vm0, %v664_v29, -inf  ;;  %681 = vmax.xlane.f32.xlu0 %v680_v32  ;;  %v769_v32 = vunpack.c.l.b16 %v501_v26 }
  0xec   : > { %687 = vmax.xlane.f32.xlu1 %v686_v31  ;;  %v768_v31 = vunpack.c.l.b16 %v500_v25 }
  0xf3   : > { %672 = vmax.xlane.f32.xlu0 %v671_v37  ;;  %v495_v37 = vld [vmem:[%s1796_s16 + $0x18] sm:$0xff] }
  0xf4   : > { %675 = vmax.xlane.f32.xlu1 %v674_v38 }
 0x14f   : > { %v667_v39 = vpop.xlane.xlu2 %666 }
 0x150   : > { %v689_v40 = vsub.f32 %v657_v4, %v667_v39  ;;  %v503_v39 = vpack.c.bf16 %v495_v37, %v495_v37 }
 0x152   : > { %v697_v41 = vmul.f32 1.442695, %v689_v40 }
 0x154   : > { %1298 = vpow2.f32 %v697_v41 }
 0x156   : > { %v679_v43 = vpop.xlane.xlu0 %678 }
 0x157   : > { %v685_v42 = vpop.xlane.xlu1 %684  ;;  %v693_v45 = vsub.f32 %v661_v17, %v679_v43  ;;  %v670_v46 = vpop.xlane.xlu2 %669  ;;  %v498_v17 = vld [vmem:[%s1796_s16 + $0x30] sm:$0xff] }
 0x158   : > { %v695_v44 = vsub.f32 %v663_v16, %v685_v42  ;;  %v690_v49 = vsub.f32 %v658_v20, %v670_v46  ;;  %v497_v16 = vld [vmem:[%s1796_s16 + $0x28] sm:$0xff]  ;;  %v499_v20 = vld [vmem:[%s1796_s16 + $0x38] sm:$0xff]  ;;  %v506_v21 = vpack.c.bf16 %v498_v17, %v498_v17  ;;  %v797_v42 = vunpack.c.l.b16 %v503_v39 }
 0x159   : > { %v705_v48 = vmul.f32 1.442695, %v693_v45  ;;  %v505_v19 = vpack.c.bf16 %v497_v16, %v497_v16  ;;  %v507_v24 = vpack.c.bf16 %v499_v20, %v499_v20 }
 0x15a   : > { %v709_v47 = vmul.f32 1.442695, %v695_v44  ;;  %v1841_v50 = vpop.eup %1298  ;;  %v699_v52 = vmul.f32 1.442695, %v690_v49 }
 0x15b   : > { %v713_v51 = vsel %vm526_vm0, %v1841_v50, 0.0  ;;  %v825_v28 = vunpack.c.l.b16 %v505_v19 }
 0x15c   : > { %1300 = vpow2.f32 %v709_v47  ;;  %714 = vadd.xlane.f32.xlu0 %v713_v51 }
 0x15d   : > { %1302 = vpow2.f32 %v705_v48  ;;  %v826_v33 = vpack.c.b16 %v825_v28, %v824_v27 }
 0x15e   : > { %v682_v54 = vpop.xlane.xlu0 %681  ;;  %1304 = vpow2.f32 %v699_v52 }
 0x15f   : > { %v688_v53 = vpop.xlane.xlu1 %687  ;;  %v694_v56 = vsub.f32 %v662_v30, %v682_v54  ;;  %v853_v30 = vunpack.c.l.b16 %v507_v24  ;;  %838 = vmatpush.bf16.msrb.mxu2 %v826_v33 }
 0x160   : > { %v696_v55 = vsub.f32 %v664_v29, %v688_v53  ;;  %v852_v29 = vunpack.c.l.b16 %v506_v21 }
 0x161   : > { %v707_v59 = vmul.f32 1.442695, %v694_v56 }
 0x162   : > { %v1845_v57 = vpop.eup %1300  ;;  %v711_v58 = vmul.f32 1.442695, %v696_v55  ;;  %v854_v34 = vpack.c.b16 %v853_v30, %v852_v29 }
 0x163   : > { %v1847_v60 = vpop.eup %1302  ;;  %v731_v61 = vsel %vm526_vm0, %v1845_v57, 0.0 }
 0x164   : > { %1306 = vpow2.f32 %v711_v58  ;;  %732 = vadd.xlane.f32.xlu1 %v731_v61  ;;  %v725_v62 = vsel %vm526_vm0, %v1847_v60, 0.0  ;;  %v1853_v1 = vpop.eup %1304  ;;  %866 = vmatpush.bf16.msrb.mxu3 %v854_v34 }
 0x165   : > { %1308 = vpow2.f32 %v707_v59  ;;  %726 = vadd.xlane.f32.xlu2 %v725_v62  ;;  %v716_v9 = vsel %vm526_vm0, %v1853_v1, 0.0 }
 0x166   : > { %v673_v63 = vpop.xlane.xlu0 %672 }
 0x167   : > { %v676_v0 = vpop.xlane.xlu1 %675  ;;  %v691_v2 = vsub.f32 %v659_v35, %v673_v63  ;;  %v770_v35 = vpack.c.b16 %v769_v32, %v768_v31 }
 0x168   : > { %v692_v3 = vsub.f32 %v660_v36, %v676_v0  ;;  %v494_v36 = vld [vmem:[%s1796_s16 + $0x10] sm:$0xff] }
 0x169   : > { %v701_v5 = vmul.f32 1.442695, %v691_v2  ;;  %v502_v38 = vpack.c.bf16 %v494_v36, %v494_v36  ;;  %782 = vmatpush.bf16.msrb.mxu0 %v770_v35 }
 0x16a   : > { %v1855_v4 = vpop.eup %1306  ;;  %v703_v6 = vmul.f32 1.442695, %v692_v3 }
 0x16b   : > { %v1857_v7 = vpop.eup %1308  ;;  %v734_v8 = vsel %vm526_vm0, %v1855_v4, 0.0  ;;  %1310 = vpow2.f32 %v701_v5  ;;  %v796_v41 = vunpack.c.l.b16 %v502_v38 }
 0x16c   : > { %v728_v10 = vsel %vm526_vm0, %v1857_v7, 0.0  ;;  %717 = vadd.xlane.f32.xlu1 %v716_v9  ;;  %1312 = vpow2.f32 %v703_v6 }
 0x16d   : > { %729 = vadd.xlane.f32.xlu0 %v728_v10  ;;  %735 = vadd.xlane.f32.xlu2 %v734_v8  ;;  %v798_v43 = vpack.c.b16 %v797_v42, %v796_v41 }
 0x16f   : > { %810 = vmatpush.bf16.msrb.mxu1 %v798_v43 }
 0x171   : > { %v1865_v11 = vpop.eup %1310 }
 0x172   : > { %v1867_v12 = vpop.eup %1312  ;;  %v719_v13 = vsel %vm526_vm0, %v1865_v11, 0.0 }
 0x173   : > { %v722_v14 = vsel %vm526_vm0, %v1867_v12, 0.0 }
 0x175   : > { %723 = vadd.xlane.f32.xlu0 %v722_v14  ;;  %720 = vadd.xlane.f32.xlu2 %v719_v13 }
 0x1cf   : > { %v715_v40 = vpop.xlane.xlu0 %714 }
 0x1d0   : > { %1314 = vrcp.f32 %v715_v40 }
 0x1d6   : > { %v1315_v44 = vpop.eup %1314 }
 0x1d7   : > { %v733_v45 = vpop.xlane.xlu1 %732  ;;  %v745_v46 = vmul.f32 %v1315_v44, %v1841_v50 }
 0x1d8   : > { %1316 = vrcp.f32 %v733_v45  ;;  %v727_v47 = vpop.xlane.xlu2 %726 }
 0x1d9   : > { %1318 = vrcp.f32 %v727_v47  ;;  %v753_v48 = vpack.c.bf16 %v745_v46, %v745_v46 }
 0x1db   : > { %882 = vst.msk [vmem:[%s1883_s29] sm:$0xf] %vm881_vm3, %v753_v48  ;;  %v763_v9 = vunpack.c.l.b16 %v753_v48 }
 0x1de   : > { %v1317_v49 = vpop.eup %1316 }
 0x1df   : > { %v1319_v51 = vpop.eup %1318  ;;  %v751_v52 = vmul.f32 %v1317_v49, %v1845_v57  ;;  %v718_v53 = vpop.xlane.xlu1 %717 }
 0x1e0   : > { %v749_v54 = vmul.f32 %v1319_v51, %v1847_v60  ;;  %v730_v50 = vpop.xlane.xlu0 %729  ;;  %1320 = vrcp.f32 %v718_v53  ;;  %v736_v55 = vpop.xlane.xlu2 %735 }
 0x1e1   : > { %v759_v56 = vpack.c.bf16 %v751_v52, %v751_v52  ;;  %1322 = vrcp.f32 %v730_v50 }
 0x1e2   : > { %v757_v58 = vpack.c.bf16 %v749_v54, %v749_v54  ;;  %1324 = vrcp.f32 %v736_v55 }
 0x1e3   : > { %888 = vst.msk [vmem:[%s1883_s29 + $0x18] sm:$0xf] %vm881_vm3, %v759_v56  ;;  %v847_v13 = vunpack.c.l.b16 %v759_v56 }
 0x1e4   : > { %886 = vst.msk [vmem:[%s1883_s29 + $0x10] sm:$0xf] %vm881_vm3, %v757_v58 }
 0x1e6   : > { %v1321_v59 = vpop.eup %1320 }
 0x1e7   : > { %v1323_v61 = vpop.eup %1322  ;;  %v746_v57 = vmul.f32 %v1321_v59, %v1853_v1  ;;  %v819_v1 = vunpack.c.l.b16 %v757_v58 }
 0x1e8   : > { %v1325_v62 = vpop.eup %1324  ;;  %v750_v60 = vmul.f32 %v1323_v61, %v1857_v7  ;;  %v724_v63 = vpop.xlane.xlu0 %723 }
 0x1e9   : > { %v721_v0 = vpop.xlane.xlu2 %720  ;;  %v754_v2 = vpack.c.bf16 %v746_v57, %v746_v57  ;;  %v752_v3 = vmul.f32 %v1325_v62, %v1855_v4  ;;  %1326 = vrcp.f32 %v724_v63 }
 0x1ea   : > { %v758_v5 = vpack.c.bf16 %v750_v60, %v750_v60  ;;  %1328 = vrcp.f32 %v721_v0 }
 0x1eb   : > { %v764_v6 = vunpack.c.l.b16 %v754_v2  ;;  %883 = vst.msk [vmem:[%s1883_s29 + $0x4] sm:$0xf] %vm881_vm3, %v754_v2  ;;  %v760_v8 = vpack.c.bf16 %v752_v3, %v752_v3 }
 0x1ec   : > { %887 = vst.msk [vmem:[%s1883_s29 + $0x14] sm:$0xf] %vm881_vm3, %v758_v5  ;;  %v820_v10 = vunpack.c.l.b16 %v758_v5 }
 0x1ed   : > { %889 = vst.msk [vmem:[%s1883_s29 + $0x1c] sm:$0xf] %vm881_vm3, %v760_v8  ;;  %v765_v7 = vpack.c.b16 %v764_v6, %v763_v9  ;;  %v848_v14 = vunpack.c.l.b16 %v760_v8 }
 0x1ee   : > { %v821_v4 = vpack.c.b16 %v820_v10, %v819_v1 }
 0x1ef   : > { %v1327_v15 = vpop.eup %1326  ;;  %1164 = vmatmul.msk.bf16.vlgmr.msrb.gmra.mxu0 %vm526_vm0, %v765_v7  ;;  %v849_v16 = vpack.c.b16 %v848_v14, %v847_v13 }
 0x1f0   : > { %v1329_v17 = vpop.eup %1328  ;;  %v748_v18 = vmul.f32 %v1327_v15, %v1867_v12  ;;  %1166 = vmatmul.msk.bf16.vlgmr.msrb.gmra.mxu2 %vm526_vm0, %v821_v4 }
 0x1f1   : > { %v747_v19 = vmul.f32 %v1329_v17, %v1865_v11  ;;  %1167 = vmatmul.msk.bf16.vlgmr.msrb.gmra.mxu3 %vm526_vm0, %v849_v16 }
 0x1f2   : > { %v756_v20 = vpack.c.bf16 %v748_v18, %v748_v18 }
 0x1f3   : > { %v755_v21 = vpack.c.bf16 %v747_v19, %v747_v19 }
 0x1f4   : > { %v792_v22 = vunpack.c.l.b16 %v756_v20  ;;  %885 = vst.msk [vmem:[%s1883_s29 + $0xc] sm:$0xf] %vm881_vm3, %v756_v20 }
 0x1f5   : > { %v791_v23 = vunpack.c.l.b16 %v755_v21  ;;  %884 = vst.msk [vmem:[%s1883_s29 + $0x8] sm:$0xf] %vm881_vm3, %v755_v21 }
 0x1f7   : > { %v793_v24 = vpack.c.b16 %v792_v22, %v791_v23 }
 0x1f9   : > { %1165 = vmatmul.msk.bf16.vlgmr.msrb.gmra.mxu1 %vm526_vm0, %v793_v24 }
 0x1fa   : > { %1507 = shalt.err (!%p1504_p0)
}
 0x1fb   : > { %s1615_s8 = smov 64   ;;  %s1616_s9 = smov 4  }
 0x1fc   : > { %1208 = dma.vmem_to_hbm [thread:$0]  (%p1725_p5), %s930_s30, 512, %s932_s18, %s896_s21, %s1615_s8, %s1615_s8, %s1616_s9  }
 0x1fd   : > { %s446_s16 = scalar_lea.vmem [#allocation11], %s1778_s0  ;;  %s1180_s4 = sshll.u32 %s1598_s24, 6 }
 0x1fe   : > { %s2009_s29 = sld [smem:[#allocation28_spill]]  ;;  %s910_s0 = sshll.u32 %s446_s16, 4  ;;  %s911_s0 = int_to_ptr.vmem [resolvable:$true] %s910_s0 }
 0x1ff   : > { %s891_s24 = scalar_lea.sflag [#allocation4], %s1775_s15 }
 0x204   : > { %s909_s23 = scalar_lea.hbm %s2009_s29, %s1180_s4  ;;  %s1528_s21 = scalar_lea.hbm %s2009_s29, 128 }
 0x205   : > { %s912_s30 = sshll.u32 %s909_s23, 4  ;;  %s913_s30 = int_to_ptr.hbm [resolvable:$true] %s912_s30 }
 0x206   : > { %s1522_s11 = sshra.s32 %s913_s30, 4  ;;  %s1523_s11 = int_to_ptr.hbm [resolvable:$true] %s1522_s11 }
 0x207   : > { %s1524_s13 = scalar_lea.hbm %s1523_s11, 64  ;;  %p1529_p10 = scmp.lt.s32.totalorder %s1523_s11, %s2009_s29 }
 0x208   : > { %p1525_p3 = scmp.ne.s32.totalorder %s1523_s11, %s1524_s13  ;;  %p1530_p1 = scmp.lt.s32.totalorder %s1528_s21, %s1524_s13 }
 0x20a   : > { %p1526_p7 = pnand %p1525_p3, %p1725_p5  ;;  %p1531_p2 = por %p1530_p1, %p1529_p10 }
 0x20c   : > { %p1527_p9 = pneg %p1526_p7 }
 0x20e   : > { %p1532_p4 = pnand %p1531_p2, %p1527_p9 }
 0x26c   : > { %v784_v11 = vpop.f32.mrf.mxu0 }
 0x26d   : > { %873 = vst.msk [vmem:[%s446_s16] sm:$0xff] %vm526_vm0, %v784_v11 }
 0x273   : > { %v840_v12 = vpop.f32.mrf.mxu2 }
 0x274   : > { %877 = vst.msk [vmem:[%s446_s16 + $0x20] sm:$0xff] %vm526_vm0, %v840_v12  ;;  %v868_v25 = vpop.f32.mrf.mxu3  ;;  %v786_v26 = vpop.f32.mrf.mxu0 }
 0x275   : > { %879 = vst.msk [vmem:[%s446_s16 + $0x30] sm:$0xff] %vm526_vm0, %v868_v25 }
 0x276   : > { %874 = vst.msk [vmem:[%s446_s16 + $0x8] sm:$0xff] %vm526_vm0, %v786_v26  ;;  %v812_v27 = vpop.f32.mrf.mxu1 }
 0x277   : > { %875 = vst.msk [vmem:[%s446_s16 + $0x10] sm:$0xff] %vm526_vm0, %v812_v27 }
 0x27b   : > { %v842_v28 = vpop.f32.mrf.mxu2 }
 0x27c   : > { %878 = vst.msk [vmem:[%s446_s16 + $0x28] sm:$0xff] %vm526_vm0, %v842_v28  ;;  %v870_v29 = vpop.f32.mrf.mxu3 }
 0x27d   : > { %880 = vst.msk [vmem:[%s446_s16 + $0x38] sm:$0xff] %vm526_vm0, %v870_v29 }
 0x27e   : > { %v814_v30 = vpop.f32.mrf.mxu1 }
 0x27f   : > { %876 = vst.msk [vmem:[%s446_s16 + $0x18] sm:$0xff] %vm526_vm0, %v814_v30 }
 0x280   : > { %1535 = shalt.err (!%p1532_p4)
}
 0x281   : > { %s1617_s15 = smov 128   ;;  %s1618_s28 = smov 8  }
 0x282   : > { %1207 = dma.vmem_to_hbm [thread:$0]  (%p1725_p5), %s911_s0, 1024, %s913_s30, %s891_s24, %s1617_s15, %s1617_s15, %s1618_s28  }
 0x283 PF: > { %s2010_s6 = sld [smem:[#allocation20_spill]]  ;;  %p1229_p8 = pnand %p1139_p11, %p1699_p6 }
 0x285   : > { %p1230_p12 = pneg %p1229_p8 }
 0x289   : > { %s946_s10 = sand.u32 1, %s2010_s6  }
 0x28a   : > { %s947_s7 = scalar_lea.sflag [#allocation4], %s946_s10 }
 0x28b   : > { %1577 = dma.done.wait (%p1230_p12), %s947_s7, 1024  }
 0x28c   : > { %1579 = vsyncadd (%p1230_p12), %s947_s7, 4294966272  ;;  %s957_s8 = scalar_lea.sflag [#allocation13], %s946_s10 }
 0x28d   : > { %1581 = dma.done.wait (%p1230_p12), %s957_s8, 512  }
 0x28e   : > { %1583 = vsyncadd (%p1230_p12), %s957_s8, 4294966784  ;;  %s32_s26 = sadd.s32 1, %s1606_s26   ;;  %s2012_s17 = sld [smem:[#allocation21_spill]] }
 0x28f   : > { %p29_p13 = scmp.ge.s32.totalorder %s32_s26, 4   ;;  %s2013_s23 = sld [smem:[#allocation24_spill]] }
 0x290   : > { %s2014_s9 = sld [smem:[#allocation23_spill]]  ;;  %s2015_s21 = smov %s1590_s22 }
 0x291   : > { %s2017_s24 = smov %s1602_s25 }
 0x292   :  { %31 = sbr.rel (!%p29_p13) target bundleno = 18 (0x12), region = 144 }
 0x294   : > { %s2016_s22 = smov %s2012_s17 }
 0x296   : > { %s2018_s25 = smov %s2014_s9 }
 0x297   :  { %963 = vsyncpa [#allocation3], 1 }
 0x298   :  { %965 = vsyncpa [#allocation3 + $0x1], 1 }
 0x299   :  { %966 = vsyncpa [#allocation6], 1 }
 0x29a   :  { %968 = vsyncpa [#allocation6 + $0x1], 1 }
 0x29b   :  { %969 = vsyncpa [#allocation9], 1 }
 0x29c   :  { %971 = vsyncpa [#allocation9 + $0x1], 1 }
 0x29d   :  { %972 = vsyncpa [#allocation4], 1 }
 0x29e   :  { %974 = vsyncpa [#allocation4 + $0x1], 1 }
 0x29f   :  { %975 = vsyncpa [#allocation13], 1 }
 0x2a0   :  { %977 = vsyncpa [#allocation13 + $0x1], 1 }

</bundles_post_ra>
